<compile_context>
chip_gen: v6e
topology: v6e:2x2x1
jax: 0.10.0
libtpu: 0.0.40
codegen_flags: <defaults>
</compile_context>

<pallas_src>
import jax
import jax.numpy as jnp
from jax.experimental import pallas as pl
from jax.experimental.pallas import tpu as pltpu


def mlp_kernel(xT_ref, w1_ref, b1_ref, w2_ref, b2_ref, oT_ref):
    """xT_ref: (in_size, TB) VMEM  - batch on the lane axis.
    w1_ref: (in_size, hidden) SMEM, b1_ref: (hidden,) SMEM
    w2_ref: (hidden, out_size) SMEM, b2_ref: (out_size,) SMEM
    oT_ref: (out_size, TB) VMEM
    """
    in_size = xT_ref.shape[0]     # static (4)
    hidden = w1_ref.shape[1]      # static (8)
    out_size = w2_ref.shape[1]    # static (2)

    x = xT_ref[...]               # (in_size, TB), lanes fully dense

    # ---- layer 1: hidden full-lane rows, scalar (SMEM) * vector FMAs ----
    l1 = []
    for j in range(hidden):
        acc = x[0:1, :] * w1_ref[0, j]
        for k in range(1, in_size):
            acc = acc + x[k:k + 1, :] * w1_ref[k, j]
        l1.append(jnp.maximum(acc + b1_ref[j], 0.0))      # (1, TB)

    # ---- layer 2: out_size full-lane rows from the hidden rows ----
    rows = []
    for o in range(out_size):
        acc = l1[0] * w2_ref[0, o]
        for j in range(1, hidden):
            acc = acc + l1[j] * w2_ref[j, o]
        rows.append(acc + b2_ref[o])                       # (1, TB)

    # Single lane-dense store of the whole (out_size, TB) tile.
    oT_ref[...] = jnp.concatenate(rows, axis=0).astype(oT_ref.dtype)


def _pick_lane_tile(batch, batch_tile):
    """Round the lane tile to a multiple of 128 and cap it so large batches
    get >= 4 grid steps (>= 2 per TensorCore on dual-core parts)."""
    tb = max(128, (min(int(batch_tile), batch) // 128) * 128)
    target_steps = 4
    if batch >= target_steps * 128:
        cap = max(128, (batch // target_steps // 128) * 128)
        tb = min(tb, cap)
    return tb


def my_network_forward(x, w1, b1, w2, b2, *, batch_tile=16384, gridless_max=4096):
    """Pallas equivalent of MyNetwork.forward.

    x : (B, input_size) float32
    w1: (input_size, 8) float32, b1: (1, 8) float32
    w2: (8, output_size) float32, b2: (1, output_size) float32
    returns (B, output_size) float32
    """
    B, in_size = x.shape
    hidden = w1.shape[1]
    out_size = w2.shape[1]

    # Batch onto the lane axis; biases flattened for SMEM scalar reads.
    xT = x.T                      # (in_size, B)
    b1s = b1.reshape(hidden)
    b2s = b2.reshape(out_size)

    smem = pl.BlockSpec(memory_space=pltpu.MemorySpace.SMEM)
    vmem = pl.BlockSpec(memory_space=pltpu.MemorySpace.VMEM)
    out_shape = jax.ShapeDtypeStruct((out_size, B), x.dtype)

    tb = _pick_lane_tile(B, batch_tile)

    if B <= max(gridless_max, 256) or B <= tb:
        # Whole problem fits comfortably in VMEM: single invocation, no grid,
        # no pipeline bookkeeping.  Full-array blocks (handles any B, incl.
        # B not a multiple of 128).
        oT = pl.pallas_call(
            mlp_kernel,
            out_shape=out_shape,
            in_specs=[vmem, smem, smem, smem, smem],
            out_specs=vmem,
        )(xT, w1, b1s, w2, b2s)
        return oT.T

    # Large-batch path: tile the lane (batch) axis; the ~58 weight/bias
    # scalars stay SMEM-resident across grid steps; the batch axis is
    # "parallel" so dual-core parts shard it across TensorCores.
    oT = pl.pallas_call(
        mlp_kernel,
        out_shape=out_shape,
        grid=(pl.cdiv(B, tb),),
        in_specs=[
            pl.BlockSpec((in_size, tb), lambda i: (0, i)),
            smem, smem, smem, smem,
        ],
        out_specs=pl.BlockSpec((out_size, tb), lambda i: (0, i)),
        compiler_params=pltpu.CompilerParams(
            dimension_semantics=("parallel",),
        ),
    )(xT, w1, b1s, w2, b2s)
    return oT.T


def init_params(key, input_size, output_size, hidden=8):
    """Deterministic init mimicking PyTorch nn.Linear default:
    U(-1/sqrt(fan_in), 1/sqrt(fan_in)) for both weight and bias."""
    k1, k2, k3, k4 = jax.random.split(key, 4)
    bound1 = 1.0 / jnp.sqrt(jnp.float32(input_size))
    bound2 = 1.0 / jnp.sqrt(jnp.float32(hidden))
    w1 = jax.random.uniform(k1, (input_size, hidden), jnp.float32, -bound1, bound1)
    b1 = jax.random.uniform(k2, (1, hidden), jnp.float32, -bound1, bound1)
    w2 = jax.random.uniform(k3, (hidden, output_size), jnp.float32, -bound2, bound2)
    b2 = jax.random.uniform(k4, (1, output_size), jnp.float32, -bound2, bound2)
    return w1, b1, w2, b2


def _ref(x, w1, b1, w2, b2):
    return jnp.maximum(x @ w1 + b1, 0.0) @ w2 + b2


if __name__ == "__main__":
    # CartPole-like shapes: state dim 4, action dim 2.
    input_size, output_size = 4, 2
    key = jax.random.PRNGKey(0)
    kx, kp, kxb = jax.random.split(key, 3)
    w1, b1, w2, b2 = init_params(kp, input_size, output_size)

    # --- small-batch path (no grid) ---
    batch = 2
    x = jax.random.normal(kx, (batch, input_size), jnp.float32)
    out = jax.block_until_ready(my_network_forward(x, w1, b1, w2, b2))
    ref = _ref(x, w1, b1, w2, b2)
    assert out.shape == (batch, output_size)
    assert jnp.allclose(out, ref, atol=1e-5), "small-batch mismatch vs reference"

    # --- batched path (grid over lane tiles, SMEM-resident weights) ---
    big_batch = 8192           # -> 4 even grid steps of 2048 lanes
    xb = jax.random.normal(kxb, (big_batch, input_size), jnp.float32)
    outb = jax.block_until_ready(my_network_forward(xb, w1, b1, w2, b2))
    refb = _ref(xb, w1, b1, w2, b2)
    assert outb.shape == (big_batch, output_size)
    assert jnp.allclose(outb, refb, atol=1e-5), "batched mismatch vs reference"

    print("KERNEL_OK")
</pallas_src>

<mosaic_0001>
module attributes {stable_mosaic.version = 11 : i64} {
  func.func @mlp_kernel(%arg0: memref<4x2xf32, #tpu.memory_space<vmem>>, %arg1: memref<4x8xf32, #tpu.memory_space<smem>>, %arg2: memref<8xf32, #tpu.memory_space<smem>>, %arg3: memref<8x2xf32, #tpu.memory_space<smem>>, %arg4: memref<2xf32, #tpu.memory_space<smem>>, %arg5: memref<2x2xf32, #tpu.memory_space<vmem>>) attributes {dimension_semantics = [], scalar_prefetch = 0 : i64, scratch_operands = 0 : i64, tpu.core_type = #tpu.core_type<tc>} {
    %c0 = arith.constant 0 : index
    %c0_0 = arith.constant 0 : index
    %0 = vector.load %arg0[%c0, %c0_0] : memref<4x2xf32, #tpu.memory_space<vmem>>, vector<4x2xf32>
    %1 = vector.extract_strided_slice %0 {offsets = [0, 0], sizes = [1, 2], strides = [1, 1]} : vector<4x2xf32> to vector<1x2xf32>
    %c0_1 = arith.constant 0 : index
    %c0_2 = arith.constant 0 : index
    %2 = memref.load %arg1[%c0_1, %c0_2] : memref<4x8xf32, #tpu.memory_space<smem>>
    %3 = vector.broadcast %2 : f32 to vector<1x2xf32>
    %4 = arith.mulf %1, %3 : vector<1x2xf32>
    %5 = vector.extract_strided_slice %0 {offsets = [1, 0], sizes = [1, 2], strides = [1, 1]} : vector<4x2xf32> to vector<1x2xf32>
    %c1 = arith.constant 1 : index
    %c0_3 = arith.constant 0 : index
    %6 = memref.load %arg1[%c1, %c0_3] : memref<4x8xf32, #tpu.memory_space<smem>>
    %7 = vector.broadcast %6 : f32 to vector<1x2xf32>
    %8 = arith.mulf %5, %7 : vector<1x2xf32>
    %9 = arith.addf %4, %8 : vector<1x2xf32>
    %10 = vector.extract_strided_slice %0 {offsets = [2, 0], sizes = [1, 2], strides = [1, 1]} : vector<4x2xf32> to vector<1x2xf32>
    %c2 = arith.constant 2 : index
    %c0_4 = arith.constant 0 : index
    %11 = memref.load %arg1[%c2, %c0_4] : memref<4x8xf32, #tpu.memory_space<smem>>
    %12 = vector.broadcast %11 : f32 to vector<1x2xf32>
    %13 = arith.mulf %10, %12 : vector<1x2xf32>
    %14 = arith.addf %9, %13 : vector<1x2xf32>
    %15 = vector.extract_strided_slice %0 {offsets = [3, 0], sizes = [1, 2], strides = [1, 1]} : vector<4x2xf32> to vector<1x2xf32>
    %c3 = arith.constant 3 : index
    %c0_5 = arith.constant 0 : index
    %16 = memref.load %arg1[%c3, %c0_5] : memref<4x8xf32, #tpu.memory_space<smem>>
    %17 = vector.broadcast %16 : f32 to vector<1x2xf32>
    %18 = arith.mulf %15, %17 : vector<1x2xf32>
    %19 = arith.addf %14, %18 : vector<1x2xf32>
    %c0_6 = arith.constant 0 : index
    %20 = memref.load %arg2[%c0_6] : memref<8xf32, #tpu.memory_space<smem>>
    %21 = vector.broadcast %20 : f32 to vector<1x2xf32>
    %22 = arith.addf %19, %21 : vector<1x2xf32>
    %cst = arith.constant 0.000000e+00 : f32
    %23 = vector.broadcast %cst : f32 to vector<1x2xf32>
    %24 = arith.maximumf %22, %23 : vector<1x2xf32>
    %25 = vector.extract_strided_slice %0 {offsets = [0, 0], sizes = [1, 2], strides = [1, 1]} : vector<4x2xf32> to vector<1x2xf32>
    %c0_7 = arith.constant 0 : index
    %c1_8 = arith.constant 1 : index
    %26 = memref.load %arg1[%c0_7, %c1_8] : memref<4x8xf32, #tpu.memory_space<smem>>
    %27 = vector.broadcast %26 : f32 to vector<1x2xf32>
    %28 = arith.mulf %25, %27 : vector<1x2xf32>
    %29 = vector.extract_strided_slice %0 {offsets = [1, 0], sizes = [1, 2], strides = [1, 1]} : vector<4x2xf32> to vector<1x2xf32>
    %c1_9 = arith.constant 1 : index
    %c1_10 = arith.constant 1 : index
    %30 = memref.load %arg1[%c1_9, %c1_10] : memref<4x8xf32, #tpu.memory_space<smem>>
    %31 = vector.broadcast %30 : f32 to vector<1x2xf32>
    %32 = arith.mulf %29, %31 : vector<1x2xf32>
    %33 = arith.addf %28, %32 : vector<1x2xf32>
    %34 = vector.extract_strided_slice %0 {offsets = [2, 0], sizes = [1, 2], strides = [1, 1]} : vector<4x2xf32> to vector<1x2xf32>
    %c2_11 = arith.constant 2 : index
    %c1_12 = arith.constant 1 : index
    %35 = memref.load %arg1[%c2_11, %c1_12] : memref<4x8xf32, #tpu.memory_space<smem>>
    %36 = vector.broadcast %35 : f32 to vector<1x2xf32>
    %37 = arith.mulf %34, %36 : vector<1x2xf32>
    %38 = arith.addf %33, %37 : vector<1x2xf32>
    %39 = vector.extract_strided_slice %0 {offsets = [3, 0], sizes = [1, 2], strides = [1, 1]} : vector<4x2xf32> to vector<1x2xf32>
    %c3_13 = arith.constant 3 : index
    %c1_14 = arith.constant 1 : index
    %40 = memref.load %arg1[%c3_13, %c1_14] : memref<4x8xf32, #tpu.memory_space<smem>>
    %41 = vector.broadcast %40 : f32 to vector<1x2xf32>
    %42 = arith.mulf %39, %41 : vector<1x2xf32>
    %43 = arith.addf %38, %42 : vector<1x2xf32>
    %c1_15 = arith.constant 1 : index
    %44 = memref.load %arg2[%c1_15] : memref<8xf32, #tpu.memory_space<smem>>
    %45 = vector.broadcast %44 : f32 to vector<1x2xf32>
    %46 = arith.addf %43, %45 : vector<1x2xf32>
    %cst_16 = arith.constant 0.000000e+00 : f32
    %47 = vector.broadcast %cst_16 : f32 to vector<1x2xf32>
    %48 = arith.maximumf %46, %47 : vector<1x2xf32>
    %49 = vector.extract_strided_slice %0 {offsets = [0, 0], sizes = [1, 2], strides = [1, 1]} : vector<4x2xf32> to vector<1x2xf32>
    %c0_17 = arith.constant 0 : index
    %c2_18 = arith.constant 2 : index
    %50 = memref.load %arg1[%c0_17, %c2_18] : memref<4x8xf32, #tpu.memory_space<smem>>
    %51 = vector.broadcast %50 : f32 to vector<1x2xf32>
    %52 = arith.mulf %49, %51 : vector<1x2xf32>
    %53 = vector.extract_strided_slice %0 {offsets = [1, 0], sizes = [1, 2], strides = [1, 1]} : vector<4x2xf32> to vector<1x2xf32>
    %c1_19 = arith.constant 1 : index
    %c2_20 = arith.constant 2 : index
    %54 = memref.load %arg1[%c1_19, %c2_20] : memref<4x8xf32, #tpu.memory_space<smem>>
    %55 = vector.broadcast %54 : f32 to vector<1x2xf32>
    %56 = arith.mulf %53, %55 : vector<1x2xf32>
    %57 = arith.addf %52, %56 : vector<1x2xf32>
    %58 = vector.extract_strided_slice %0 {offsets = [2, 0], sizes = [1, 2], strides = [1, 1]} : vector<4x2xf32> to vector<1x2xf32>
    %c2_21 = arith.constant 2 : index
    %c2_22 = arith.constant 2 : index
    %59 = memref.load %arg1[%c2_21, %c2_22] : memref<4x8xf32, #tpu.memory_space<smem>>
    %60 = vector.broadcast %59 : f32 to vector<1x2xf32>
    %61 = arith.mulf %58, %60 : vector<1x2xf32>
    %62 = arith.addf %57, %61 : vector<1x2xf32>
    %63 = vector.extract_strided_slice %0 {offsets = [3, 0], sizes = [1, 2], strides = [1, 1]} : vector<4x2xf32> to vector<1x2xf32>
    %c3_23 = arith.constant 3 : index
    %c2_24 = arith.constant 2 : index
    %64 = memref.load %arg1[%c3_23, %c2_24] : memref<4x8xf32, #tpu.memory_space<smem>>
    %65 = vector.broadcast %64 : f32 to vector<1x2xf32>
    %66 = arith.mulf %63, %65 : vector<1x2xf32>
    %67 = arith.addf %62, %66 : vector<1x2xf32>
    %c2_25 = arith.constant 2 : index
    %68 = memref.load %arg2[%c2_25] : memref<8xf32, #tpu.memory_space<smem>>
    %69 = vector.broadcast %68 : f32 to vector<1x2xf32>
    %70 = arith.addf %67, %69 : vector<1x2xf32>
    %cst_26 = arith.constant 0.000000e+00 : f32
    %71 = vector.broadcast %cst_26 : f32 to vector<1x2xf32>
    %72 = arith.maximumf %70, %71 : vector<1x2xf32>
    %73 = vector.extract_strided_slice %0 {offsets = [0, 0], sizes = [1, 2], strides = [1, 1]} : vector<4x2xf32> to vector<1x2xf32>
    %c0_27 = arith.constant 0 : index
    %c3_28 = arith.constant 3 : index
    %74 = memref.load %arg1[%c0_27, %c3_28] : memref<4x8xf32, #tpu.memory_space<smem>>
    %75 = vector.broadcast %74 : f32 to vector<1x2xf32>
    %76 = arith.mulf %73, %75 : vector<1x2xf32>
    %77 = vector.extract_strided_slice %0 {offsets = [1, 0], sizes = [1, 2], strides = [1, 1]} : vector<4x2xf32> to vector<1x2xf32>
    %c1_29 = arith.constant 1 : index
    %c3_30 = arith.constant 3 : index
    %78 = memref.load %arg1[%c1_29, %c3_30] : memref<4x8xf32, #tpu.memory_space<smem>>
    %79 = vector.broadcast %78 : f32 to vector<1x2xf32>
    %80 = arith.mulf %77, %79 : vector<1x2xf32>
    %81 = arith.addf %76, %80 : vector<1x2xf32>
    %82 = vector.extract_strided_slice %0 {offsets = [2, 0], sizes = [1, 2], strides = [1, 1]} : vector<4x2xf32> to vector<1x2xf32>
    %c2_31 = arith.constant 2 : index
    %c3_32 = arith.constant 3 : index
    %83 = memref.load %arg1[%c2_31, %c3_32] : memref<4x8xf32, #tpu.memory_space<smem>>
    %84 = vector.broadcast %83 : f32 to vector<1x2xf32>
    %85 = arith.mulf %82, %84 : vector<1x2xf32>
    %86 = arith.addf %81, %85 : vector<1x2xf32>
    %87 = vector.extract_strided_slice %0 {offsets = [3, 0], sizes = [1, 2], strides = [1, 1]} : vector<4x2xf32> to vector<1x2xf32>
    %c3_33 = arith.constant 3 : index
    %c3_34 = arith.constant 3 : index
    %88 = memref.load %arg1[%c3_33, %c3_34] : memref<4x8xf32, #tpu.memory_space<smem>>
    %89 = vector.broadcast %88 : f32 to vector<1x2xf32>
    %90 = arith.mulf %87, %89 : vector<1x2xf32>
    %91 = arith.addf %86, %90 : vector<1x2xf32>
    %c3_35 = arith.constant 3 : index
    %92 = memref.load %arg2[%c3_35] : memref<8xf32, #tpu.memory_space<smem>>
    %93 = vector.broadcast %92 : f32 to vector<1x2xf32>
    %94 = arith.addf %91, %93 : vector<1x2xf32>
    %cst_36 = arith.constant 0.000000e+00 : f32
    %95 = vector.broadcast %cst_36 : f32 to vector<1x2xf32>
    %96 = arith.maximumf %94, %95 : vector<1x2xf32>
    %97 = vector.extract_strided_slice %0 {offsets = [0, 0], sizes = [1, 2], strides = [1, 1]} : vector<4x2xf32> to vector<1x2xf32>
    %c0_37 = arith.constant 0 : index
    %c4 = arith.constant 4 : index
    %98 = memref.load %arg1[%c0_37, %c4] : memref<4x8xf32, #tpu.memory_space<smem>>
    %99 = vector.broadcast %98 : f32 to vector<1x2xf32>
    %100 = arith.mulf %97, %99 : vector<1x2xf32>
    %101 = vector.extract_strided_slice %0 {offsets = [1, 0], sizes = [1, 2], strides = [1, 1]} : vector<4x2xf32> to vector<1x2xf32>
    %c1_38 = arith.constant 1 : index
    %c4_39 = arith.constant 4 : index
    %102 = memref.load %arg1[%c1_38, %c4_39] : memref<4x8xf32, #tpu.memory_space<smem>>
    %103 = vector.broadcast %102 : f32 to vector<1x2xf32>
    %104 = arith.mulf %101, %103 : vector<1x2xf32>
    %105 = arith.addf %100, %104 : vector<1x2xf32>
    %106 = vector.extract_strided_slice %0 {offsets = [2, 0], sizes = [1, 2], strides = [1, 1]} : vector<4x2xf32> to vector<1x2xf32>
    %c2_40 = arith.constant 2 : index
    %c4_41 = arith.constant 4 : index
    %107 = memref.load %arg1[%c2_40, %c4_41] : memref<4x8xf32, #tpu.memory_space<smem>>
    %108 = vector.broadcast %107 : f32 to vector<1x2xf32>
    %109 = arith.mulf %106, %108 : vector<1x2xf32>
    %110 = arith.addf %105, %109 : vector<1x2xf32>
    %111 = vector.extract_strided_slice %0 {offsets = [3, 0], sizes = [1, 2], strides = [1, 1]} : vector<4x2xf32> to vector<1x2xf32>
    %c3_42 = arith.constant 3 : index
    %c4_43 = arith.constant 4 : index
    %112 = memref.load %arg1[%c3_42, %c4_43] : memref<4x8xf32, #tpu.memory_space<smem>>
    %113 = vector.broadcast %112 : f32 to vector<1x2xf32>
    %114 = arith.mulf %111, %113 : vector<1x2xf32>
    %115 = arith.addf %110, %114 : vector<1x2xf32>
    %c4_44 = arith.constant 4 : index
    %116 = memref.load %arg2[%c4_44] : memref<8xf32, #tpu.memory_space<smem>>
    %117 = vector.broadcast %116 : f32 to vector<1x2xf32>
    %118 = arith.addf %115, %117 : vector<1x2xf32>
    %cst_45 = arith.constant 0.000000e+00 : f32
    %119 = vector.broadcast %cst_45 : f32 to vector<1x2xf32>
    %120 = arith.maximumf %118, %119 : vector<1x2xf32>
    %121 = vector.extract_strided_slice %0 {offsets = [0, 0], sizes = [1, 2], strides = [1, 1]} : vector<4x2xf32> to vector<1x2xf32>
    %c0_46 = arith.constant 0 : index
    %c5 = arith.constant 5 : index
    %122 = memref.load %arg1[%c0_46, %c5] : memref<4x8xf32, #tpu.memory_space<smem>>
    %123 = vector.broadcast %122 : f32 to vector<1x2xf32>
    %124 = arith.mulf %121, %123 : vector<1x2xf32>
    %125 = vector.extract_strided_slice %0 {offsets = [1, 0], sizes = [1, 2], strides = [1, 1]} : vector<4x2xf32> to vector<1x2xf32>
    %c1_47 = arith.constant 1 : index
    %c5_48 = arith.constant 5 : index
    %126 = memref.load %arg1[%c1_47, %c5_48] : memref<4x8xf32, #tpu.memory_space<smem>>
    %127 = vector.broadcast %126 : f32 to vector<1x2xf32>
    %128 = arith.mulf %125, %127 : vector<1x2xf32>
    %129 = arith.addf %124, %128 : vector<1x2xf32>
    %130 = vector.extract_strided_slice %0 {offsets = [2, 0], sizes = [1, 2], strides = [1, 1]} : vector<4x2xf32> to vector<1x2xf32>
    %c2_49 = arith.constant 2 : index
    %c5_50 = arith.constant 5 : index
    %131 = memref.load %arg1[%c2_49, %c5_50] : memref<4x8xf32, #tpu.memory_space<smem>>
    %132 = vector.broadcast %131 : f32 to vector<1x2xf32>
    %133 = arith.mulf %130, %132 : vector<1x2xf32>
    %134 = arith.addf %129, %133 : vector<1x2xf32>
    %135 = vector.extract_strided_slice %0 {offsets = [3, 0], sizes = [1, 2], strides = [1, 1]} : vector<4x2xf32> to vector<1x2xf32>
    %c3_51 = arith.constant 3 : index
    %c5_52 = arith.constant 5 : index
    %136 = memref.load %arg1[%c3_51, %c5_52] : memref<4x8xf32, #tpu.memory_space<smem>>
    %137 = vector.broadcast %136 : f32 to vector<1x2xf32>
    %138 = arith.mulf %135, %137 : vector<1x2xf32>
    %139 = arith.addf %134, %138 : vector<1x2xf32>
    %c5_53 = arith.constant 5 : index
    %140 = memref.load %arg2[%c5_53] : memref<8xf32, #tpu.memory_space<smem>>
    %141 = vector.broadcast %140 : f32 to vector<1x2xf32>
    %142 = arith.addf %139, %141 : vector<1x2xf32>
    %cst_54 = arith.constant 0.000000e+00 : f32
    %143 = vector.broadcast %cst_54 : f32 to vector<1x2xf32>
    %144 = arith.maximumf %142, %143 : vector<1x2xf32>
    %145 = vector.extract_strided_slice %0 {offsets = [0, 0], sizes = [1, 2], strides = [1, 1]} : vector<4x2xf32> to vector<1x2xf32>
    %c0_55 = arith.constant 0 : index
    %c6 = arith.constant 6 : index
    %146 = memref.load %arg1[%c0_55, %c6] : memref<4x8xf32, #tpu.memory_space<smem>>
    %147 = vector.broadcast %146 : f32 to vector<1x2xf32>
    %148 = arith.mulf %145, %147 : vector<1x2xf32>
    %149 = vector.extract_strided_slice %0 {offsets = [1, 0], sizes = [1, 2], strides = [1, 1]} : vector<4x2xf32> to vector<1x2xf32>
    %c1_56 = arith.constant 1 : index
    %c6_57 = arith.constant 6 : index
    %150 = memref.load %arg1[%c1_56, %c6_57] : memref<4x8xf32, #tpu.memory_space<smem>>
    %151 = vector.broadcast %150 : f32 to vector<1x2xf32>
    %152 = arith.mulf %149, %151 : vector<1x2xf32>
    %153 = arith.addf %148, %152 : vector<1x2xf32>
    %154 = vector.extract_strided_slice %0 {offsets = [2, 0], sizes = [1, 2], strides = [1, 1]} : vector<4x2xf32> to vector<1x2xf32>
    %c2_58 = arith.constant 2 : index
    %c6_59 = arith.constant 6 : index
    %155 = memref.load %arg1[%c2_58, %c6_59] : memref<4x8xf32, #tpu.memory_space<smem>>
    %156 = vector.broadcast %155 : f32 to vector<1x2xf32>
    %157 = arith.mulf %154, %156 : vector<1x2xf32>
    %158 = arith.addf %153, %157 : vector<1x2xf32>
    %159 = vector.extract_strided_slice %0 {offsets = [3, 0], sizes = [1, 2], strides = [1, 1]} : vector<4x2xf32> to vector<1x2xf32>
    %c3_60 = arith.constant 3 : index
    %c6_61 = arith.constant 6 : index
    %160 = memref.load %arg1[%c3_60, %c6_61] : memref<4x8xf32, #tpu.memory_space<smem>>
    %161 = vector.broadcast %160 : f32 to vector<1x2xf32>
    %162 = arith.mulf %159, %161 : vector<1x2xf32>
    %163 = arith.addf %158, %162 : vector<1x2xf32>
    %c6_62 = arith.constant 6 : index
    %164 = memref.load %arg2[%c6_62] : memref<8xf32, #tpu.memory_space<smem>>
    %165 = vector.broadcast %164 : f32 to vector<1x2xf32>
    %166 = arith.addf %163, %165 : vector<1x2xf32>
    %cst_63 = arith.constant 0.000000e+00 : f32
    %167 = vector.broadcast %cst_63 : f32 to vector<1x2xf32>
    %168 = arith.maximumf %166, %167 : vector<1x2xf32>
    %169 = vector.extract_strided_slice %0 {offsets = [0, 0], sizes = [1, 2], strides = [1, 1]} : vector<4x2xf32> to vector<1x2xf32>
    %c0_64 = arith.constant 0 : index
    %c7 = arith.constant 7 : index
    %170 = memref.load %arg1[%c0_64, %c7] : memref<4x8xf32, #tpu.memory_space<smem>>
    %171 = vector.broadcast %170 : f32 to vector<1x2xf32>
    %172 = arith.mulf %169, %171 : vector<1x2xf32>
    %173 = vector.extract_strided_slice %0 {offsets = [1, 0], sizes = [1, 2], strides = [1, 1]} : vector<4x2xf32> to vector<1x2xf32>
    %c1_65 = arith.constant 1 : index
    %c7_66 = arith.constant 7 : index
    %174 = memref.load %arg1[%c1_65, %c7_66] : memref<4x8xf32, #tpu.memory_space<smem>>
    %175 = vector.broadcast %174 : f32 to vector<1x2xf32>
    %176 = arith.mulf %173, %175 : vector<1x2xf32>
    %177 = arith.addf %172, %176 : vector<1x2xf32>
    %178 = vector.extract_strided_slice %0 {offsets = [2, 0], sizes = [1, 2], strides = [1, 1]} : vector<4x2xf32> to vector<1x2xf32>
    %c2_67 = arith.constant 2 : index
    %c7_68 = arith.constant 7 : index
    %179 = memref.load %arg1[%c2_67, %c7_68] : memref<4x8xf32, #tpu.memory_space<smem>>
    %180 = vector.broadcast %179 : f32 to vector<1x2xf32>
    %181 = arith.mulf %178, %180 : vector<1x2xf32>
    %182 = arith.addf %177, %181 : vector<1x2xf32>
    %183 = vector.extract_strided_slice %0 {offsets = [3, 0], sizes = [1, 2], strides = [1, 1]} : vector<4x2xf32> to vector<1x2xf32>
    %c3_69 = arith.constant 3 : index
    %c7_70 = arith.constant 7 : index
    %184 = memref.load %arg1[%c3_69, %c7_70] : memref<4x8xf32, #tpu.memory_space<smem>>
    %185 = vector.broadcast %184 : f32 to vector<1x2xf32>
    %186 = arith.mulf %183, %185 : vector<1x2xf32>
    %187 = arith.addf %182, %186 : vector<1x2xf32>
    %c7_71 = arith.constant 7 : index
    %188 = memref.load %arg2[%c7_71] : memref<8xf32, #tpu.memory_space<smem>>
    %189 = vector.broadcast %188 : f32 to vector<1x2xf32>
    %190 = arith.addf %187, %189 : vector<1x2xf32>
    %cst_72 = arith.constant 0.000000e+00 : f32
    %191 = vector.broadcast %cst_72 : f32 to vector<1x2xf32>
    %192 = arith.maximumf %190, %191 : vector<1x2xf32>
    %c0_73 = arith.constant 0 : index
    %c0_74 = arith.constant 0 : index
    %193 = memref.load %arg3[%c0_73, %c0_74] : memref<8x2xf32, #tpu.memory_space<smem>>
    %194 = vector.broadcast %193 : f32 to vector<1x2xf32>
    %195 = arith.mulf %24, %194 : vector<1x2xf32>
    %c1_75 = arith.constant 1 : index
    %c0_76 = arith.constant 0 : index
    %196 = memref.load %arg3[%c1_75, %c0_76] : memref<8x2xf32, #tpu.memory_space<smem>>
    %197 = vector.broadcast %196 : f32 to vector<1x2xf32>
    %198 = arith.mulf %48, %197 : vector<1x2xf32>
    %199 = arith.addf %195, %198 : vector<1x2xf32>
    %c2_77 = arith.constant 2 : index
    %c0_78 = arith.constant 0 : index
    %200 = memref.load %arg3[%c2_77, %c0_78] : memref<8x2xf32, #tpu.memory_space<smem>>
    %201 = vector.broadcast %200 : f32 to vector<1x2xf32>
    %202 = arith.mulf %72, %201 : vector<1x2xf32>
    %203 = arith.addf %199, %202 : vector<1x2xf32>
    %c3_79 = arith.constant 3 : index
    %c0_80 = arith.constant 0 : index
    %204 = memref.load %arg3[%c3_79, %c0_80] : memref<8x2xf32, #tpu.memory_space<smem>>
    %205 = vector.broadcast %204 : f32 to vector<1x2xf32>
    %206 = arith.mulf %96, %205 : vector<1x2xf32>
    %207 = arith.addf %203, %206 : vector<1x2xf32>
    %c4_81 = arith.constant 4 : index
    %c0_82 = arith.constant 0 : index
    %208 = memref.load %arg3[%c4_81, %c0_82] : memref<8x2xf32, #tpu.memory_space<smem>>
    %209 = vector.broadcast %208 : f32 to vector<1x2xf32>
    %210 = arith.mulf %120, %209 : vector<1x2xf32>
    %211 = arith.addf %207, %210 : vector<1x2xf32>
    %c5_83 = arith.constant 5 : index
    %c0_84 = arith.constant 0 : index
    %212 = memref.load %arg3[%c5_83, %c0_84] : memref<8x2xf32, #tpu.memory_space<smem>>
    %213 = vector.broadcast %212 : f32 to vector<1x2xf32>
    %214 = arith.mulf %144, %213 : vector<1x2xf32>
    %215 = arith.addf %211, %214 : vector<1x2xf32>
    %c6_85 = arith.constant 6 : index
    %c0_86 = arith.constant 0 : index
    %216 = memref.load %arg3[%c6_85, %c0_86] : memref<8x2xf32, #tpu.memory_space<smem>>
    %217 = vector.broadcast %216 : f32 to vector<1x2xf32>
    %218 = arith.mulf %168, %217 : vector<1x2xf32>
    %219 = arith.addf %215, %218 : vector<1x2xf32>
    %c7_87 = arith.constant 7 : index
    %c0_88 = arith.constant 0 : index
    %220 = memref.load %arg3[%c7_87, %c0_88] : memref<8x2xf32, #tpu.memory_space<smem>>
    %221 = vector.broadcast %220 : f32 to vector<1x2xf32>
    %222 = arith.mulf %192, %221 : vector<1x2xf32>
    %223 = arith.addf %219, %222 : vector<1x2xf32>
    %c0_89 = arith.constant 0 : index
    %224 = memref.load %arg4[%c0_89] : memref<2xf32, #tpu.memory_space<smem>>
    %225 = vector.broadcast %224 : f32 to vector<1x2xf32>
    %226 = arith.addf %223, %225 : vector<1x2xf32>
    %c0_90 = arith.constant 0 : index
    %c1_91 = arith.constant 1 : index
    %227 = memref.load %arg3[%c0_90, %c1_91] : memref<8x2xf32, #tpu.memory_space<smem>>
    %228 = vector.broadcast %227 : f32 to vector<1x2xf32>
    %229 = arith.mulf %24, %228 : vector<1x2xf32>
    %c1_92 = arith.constant 1 : index
    %c1_93 = arith.constant 1 : index
    %230 = memref.load %arg3[%c1_92, %c1_93] : memref<8x2xf32, #tpu.memory_space<smem>>
    %231 = vector.broadcast %230 : f32 to vector<1x2xf32>
    %232 = arith.mulf %48, %231 : vector<1x2xf32>
    %233 = arith.addf %229, %232 : vector<1x2xf32>
    %c2_94 = arith.constant 2 : index
    %c1_95 = arith.constant 1 : index
    %234 = memref.load %arg3[%c2_94, %c1_95] : memref<8x2xf32, #tpu.memory_space<smem>>
    %235 = vector.broadcast %234 : f32 to vector<1x2xf32>
    %236 = arith.mulf %72, %235 : vector<1x2xf32>
    %237 = arith.addf %233, %236 : vector<1x2xf32>
    %c3_96 = arith.constant 3 : index
    %c1_97 = arith.constant 1 : index
    %238 = memref.load %arg3[%c3_96, %c1_97] : memref<8x2xf32, #tpu.memory_space<smem>>
    %239 = vector.broadcast %238 : f32 to vector<1x2xf32>
    %240 = arith.mulf %96, %239 : vector<1x2xf32>
    %241 = arith.addf %237, %240 : vector<1x2xf32>
    %c4_98 = arith.constant 4 : index
    %c1_99 = arith.constant 1 : index
    %242 = memref.load %arg3[%c4_98, %c1_99] : memref<8x2xf32, #tpu.memory_space<smem>>
    %243 = vector.broadcast %242 : f32 to vector<1x2xf32>
    %244 = arith.mulf %120, %243 : vector<1x2xf32>
    %245 = arith.addf %241, %244 : vector<1x2xf32>
    %c5_100 = arith.constant 5 : index
    %c1_101 = arith.constant 1 : index
    %246 = memref.load %arg3[%c5_100, %c1_101] : memref<8x2xf32, #tpu.memory_space<smem>>
    %247 = vector.broadcast %246 : f32 to vector<1x2xf32>
    %248 = arith.mulf %144, %247 : vector<1x2xf32>
    %249 = arith.addf %245, %248 : vector<1x2xf32>
    %c6_102 = arith.constant 6 : index
    %c1_103 = arith.constant 1 : index
    %250 = memref.load %arg3[%c6_102, %c1_103] : memref<8x2xf32, #tpu.memory_space<smem>>
    %251 = vector.broadcast %250 : f32 to vector<1x2xf32>
    %252 = arith.mulf %168, %251 : vector<1x2xf32>
    %253 = arith.addf %249, %252 : vector<1x2xf32>
    %c7_104 = arith.constant 7 : index
    %c1_105 = arith.constant 1 : index
    %254 = memref.load %arg3[%c7_104, %c1_105] : memref<8x2xf32, #tpu.memory_space<smem>>
    %255 = vector.broadcast %254 : f32 to vector<1x2xf32>
    %256 = arith.mulf %192, %255 : vector<1x2xf32>
    %257 = arith.addf %253, %256 : vector<1x2xf32>
    %c1_106 = arith.constant 1 : index
    %258 = memref.load %arg4[%c1_106] : memref<2xf32, #tpu.memory_space<smem>>
    %259 = vector.broadcast %258 : f32 to vector<1x2xf32>
    %260 = arith.addf %257, %259 : vector<1x2xf32>
    %261 = tpu.concatenate %226, %260 in 0 : vector<1x2xf32>, vector<1x2xf32> -> vector<2x2xf32>
    %c0_107 = arith.constant 0 : index
    %c0_108 = arith.constant 0 : index
    %262 = vector.load %arg5[%c0_107, %c0_108] : memref<2x2xf32, #tpu.memory_space<vmem>>, vector<2x2xf32>
    tpu.vector_store %arg5[%c0_107, %c0_108], %261 {strides = array<i32>} : memref<2x2xf32, #tpu.memory_space<vmem>>, vector<2x2xf32>,
    return
  }
}

</mosaic_0001>

<bundles_post_ra>
// kernel: tpu_custom_call.1
= control target key start
LH: loop header
LB: loop body
LE: loop exit
PB: predicated region body
PF: predicated region fallthrough
CT: control target
= control target key end

     0   :  { %10 = vsyncpa [#allocation4], 0  ;;  %s772_s0 = inlined_call_operand.vmem [shape: f32[4,2], index: 0, kind: input, shape index: {}]   ;;  %s773_s1 = inlined_call_operand.vmem [shape: f32[4,8], index: 1, kind: input, shape index: {}]   ;;  %s774_s2 = inlined_call_operand.vmem [shape: f32[8], index: 2, kind: input, shape index: {}]   ;;  %s775_s3 = inlined_call_operand.vmem [shape: f32[8,2], index: 3, kind: input, shape index: {}]   ;;  %s776_s4 = inlined_call_operand.vmem [shape: f32[2], index: 4, kind: input, shape index: {}]   ;;  %s777_s5 = inlined_call_operand.hbm [shape: f32[2,2], index: 5, kind: output, shape index: {}]  }
   0x1   :  { %11 = vsyncpa [#allocation6], 0 }
   0x2   :  { %12 = vsyncpa [#allocation9], 0  ;;  %s32_s20 = sshll.u32 %s774_s2, 4  ;;  %s33_s20 = int_to_ptr.vmem [resolvable:$true] %s32_s20 }
   0x3   :  { %13 = vsyncpa [#allocation3], 0  ;;  %s22_s23 = sshll.u32 %s773_s1, 4  ;;  %s445_s24 = scalar_lea.vmem %s33_s20, 16  ;;  %s23_s23 = int_to_ptr.vmem [resolvable:$true] %s22_s23 }
   0x4   :  { %p446_p0 = scmp.ne.s32.totalorder %s33_s20, %s445_s24  ;;  %p450_p1 = scmp.lt.s32.totalorder %s33_s20, %s33_s20 }
   0x5   :  { %p451_p2 = scmp.lt.s32.totalorder %s445_s24, %s445_s24 }
   0x7   :  { %p452_p3 = por %p451_p2, %p450_p1 }
   0x9   :  { %p453_p4 = pnand %p452_p3, %p446_p0 }
   0xb   :  { %456 = shalt.err (!%p453_p4)
}
   0xc   :  { %s521_s25 = smov [#allocation5]   ;;  %s457_s26 = scalar_lea.vmem %s23_s23, 64 }
   0xd   :  { %35 = dma.vmem_to_smem %s33_s20, 16, %s521_s25, [#allocation6]  }
   0xe   :  { %p458_p5 = scmp.ne.s32.totalorder %s23_s23, %s457_s26  ;;  %p462_p6 = scmp.lt.s32.totalorder %s23_s23, %s23_s23 }
   0xf   :  { %p463_p7 = scmp.lt.s32.totalorder %s457_s26, %s457_s26 }
  0x11   :  { %p464_p8 = por %p463_p7, %p462_p6 }
  0x13   :  { %p465_p9 = pnand %p464_p8, %p458_p5 }
  0x15   :  { %468 = shalt.err (!%p465_p9)
}
  0x16   :  { %s522_s2 = smov [#allocation2]   ;;  %s42_s28 = sshll.u32 %s775_s3, 4  ;;  %s43_s28 = int_to_ptr.vmem [resolvable:$true] %s42_s28 }
  0x17   :  { %25 = dma.vmem_to_smem %s23_s23, 64, %s522_s2, [#allocation4]  }
  0x18   :  { %s52_s6 = sshll.u32 %s776_s4, 4  ;;  %s469_s7 = scalar_lea.vmem %s43_s28, 128  ;;  %s53_s6 = int_to_ptr.vmem [resolvable:$true] %s52_s6 }
  0x19   :  { %p470_p10 = scmp.ne.s32.totalorder %s43_s28, %s469_s7  ;;  %p474_p11 = scmp.lt.s32.totalorder %s43_s28, %s43_s28 }
  0x1a   :  { %p475_p12 = scmp.lt.s32.totalorder %s469_s7, %s469_s7 }
  0x1c   :  { %p476_p13 = por %p475_p12, %p474_p11 }
  0x1e   :  { %p477_p0 = pnand %p476_p13, %p470_p10 }
  0x20   :  { %480 = shalt.err (!%p477_p0)
}
  0x21   :  { %s523_s8 = smov [#allocation7]   ;;  %s481_s9 = scalar_lea.vmem %s53_s6, 16 }
  0x22   :  { %45 = dma.vmem_to_smem %s43_s28, 128, %s523_s8, [#allocation6]  }
  0x23   :  { %p482_p1 = scmp.ne.s32.totalorder %s53_s6, %s481_s9  ;;  %p486_p2 = scmp.lt.s32.totalorder %s53_s6, %s53_s6 }
  0x24   :  { %p487_p3 = scmp.lt.s32.totalorder %s481_s9, %s481_s9 }
  0x26   :  { %p488_p4 = por %p487_p3, %p486_p2 }
  0x28   :  { %p489_p5 = pnand %p488_p4, %p482_p1 }
  0x2a   :  { %492 = shalt.err (!%p489_p5)
}
  0x2b   :  { %s524_s3 = smov [#allocation8]  }
  0x2c   :  { %55 = dma.vmem_to_smem %s53_s6, 16, %s524_s3, [#allocation9]  }
  0x2d   :  { %513 = dma.done.wait [#allocation4], 64  }
  0x2e   :  { %514 = vsyncadd [#allocation4], 4294967232 }
  0x2f   :  { %515 = dma.done.wait [#allocation6], 144  }
  0x30   :  { %516 = vsyncadd [#allocation6], 4294967152 }
  0x31   :  { %517 = dma.done.wait [#allocation9], 16  }
  0x32   :  { %518 = vsyncadd [#allocation9], 4294967280 }
  0x33   :  { %68 = sfence }
  0x34   :  { %s568_s4 = sld [smem:[#allocation2]]  ;;  %v589_v0 = vld [vmem:[%s772_s0] sm:$0xf]  ;;  %vm365_vm0 = vcmask 1040384   ;;  %vm367_vm1 = vcmask 9216  }
  0x35   :  { %s386_s10 = sld [smem:[#allocation2 + $0x80]] }
  0x36   :  { %s570_s11 = sld [smem:[#allocation2 + $0x100]] }
  0x37   :  { %s572_s12 = sld [smem:[#allocation2 + $0x180]] }
  0x38   :  { %s574_s13 = sld [smem:[#allocation5]] }
  0x39   :  { %s390_s14 = sld [smem:[#allocation2 + $0x81]] }
  0x3a   :  { %s576_s15 = sld [smem:[#allocation2 + $0x1]]  ;;  %v71_v3 = vstv %s568_s4 }
  0x3b   :  { %s578_s16 = sld [smem:[#allocation2 + $0x101]]  ;;  %v74_v1 = vstv %s386_s10  ;;  %v72_v14 = vmul.f32 %v71_v3, %v589_v0 }
  0x3c   :  { %s580_s17 = sld [smem:[#allocation2 + $0x181]]  ;;  %v75_v4 = vmul.f32 %v74_v1, %v589_v0  ;;  %v81_v5 = vstv %s570_s11 }
  0x3d   :  { %s582_s18 = sld [smem:[#allocation2 + $0x2]]  ;;  %v88_v6 = vstv %s572_s12  ;;  %v82_v16 = vmul.f32 %v81_v5, %v589_v0 }
  0x3e   :  { %s395_s19 = sld [smem:[#allocation2 + $0x82]]  ;;  %v77_v15 = vrot.slane %v75_v4, 1  ;;  %v618_v17 = vmul.f32 %v88_v6, %v589_v0  ;;  %v95_v26 = vstv %s574_s13 }
  0x3f   :  { %s584_s20 = sld [smem:[#allocation2 + $0x102]]  ;;  %v102_v2 = vstv %s390_s14  ;;  %v84_v30 = vrot.slane %v82_v16, 2 }
  0x40   :  { %s591_s23 = sld [smem:[#allocation5 + $0x1]]  ;;  %v103_v7 = vmul.f32 %v102_v2, %v589_v0  ;;  %v99_v9 = vstv %s576_s15  ;;  %v79_v29 = vadd.f32 %v77_v15, %v72_v14  ;;  %v91_v33 = vrot.slane %v618_v17, 3 }
  0x41   :  { %s593_s24 = sld [smem:[#allocation2 + $0x182]]  ;;  %v109_v10 = vstv %s578_s16  ;;  %v100_v18 = vmul.f32 %v99_v9, %v589_v0 }
  0x42   :  { %s595_s25 = sld [smem:[#allocation2 + $0x3]]  ;;  %v105_v19 = vrot.slane %v103_v7, 1  ;;  %v110_v20 = vmul.f32 %v109_v10, %v589_v0  ;;  %v116_v21 = vstv %s580_s17  ;;  %v86_v49 = vadd.f32 %v84_v30, %v79_v29 }
  0x43   :  { %s599_s26 = sld [smem:[#allocation2 + $0x83]]  ;;  %v127_v12 = vstv %s582_s18  ;;  %v117_v36 = vmul.f32 %v116_v21, %v589_v0 }
  0x44   :  { %v130_v8 = vstv %s395_s19  ;;  %s604_s0 = sld [smem:[#allocation2 + $0x103]]  ;;  %v128_v22 = vmul.f32 %v127_v12, %v589_v0  ;;  %v107_v34 = vadd.f32 %v105_v19, %v100_v18  ;;  %v112_v35 = vrot.slane %v110_v20, 2 }
  0x45   :  { %v131_v11 = vmul.f32 %v130_v8, %v589_v0  ;;  %s609_s2 = sld [smem:[#allocation5 + $0x2]]  ;;  %v137_v13 = vstv %s584_s20  ;;  %v119_v50 = vrot.slane %v117_v36, 3  ;;  %v93_v6 = vadd.f32 %v91_v33, %v86_v49 }
  0x46   :  { %s613_s1 = sld [smem:[#allocation2 + $0x183]]  ;;  %v138_v24 = vmul.f32 %v137_v13, %v589_v0  ;;  %v114_v53 = vadd.f32 %v112_v35, %v107_v34  ;;  %v123_v2 = vstv %s591_s23 }
  0x47   :  { %s620_s27 = sld [smem:[#allocation2 + $0x4]]  ;;  %v133_v23 = vrot.slane %v131_v11, 1  ;;  %v144_v27 = vstv %s593_s24 }
  0x48   :  { %s625_s28 = sld [smem:[#allocation2 + $0x84]]  ;;  %v155_v31 = vstv %s595_s25  ;;  %v140_v38 = vrot.slane %v138_v24, 2  ;;  %v145_v39 = vmul.f32 %v144_v27, %v589_v0  ;;  %v121_v10 = vadd.f32 %v119_v50, %v114_v53 }
  0x49   :  { %v158_v25 = vstv %s599_s26  ;;  %s630_s29 = sld [smem:[#allocation2 + $0x104]]  ;;  %v135_v37 = vadd.f32 %v133_v23, %v128_v22  ;;  %v156_v41 = vmul.f32 %v155_v31, %v589_v0  ;;  %v696_v22 = vadd.f32 %v95_v26, %v93_v6 }
  0x4a   :  { %v159_v28 = vmul.f32 %v158_v25, %v589_v0  ;;  %s635_s30 = sld [smem:[#allocation2 + $0x184]]  ;;  %v165_v32 = vstv %s604_s0  ;;  %v147_v55 = vrot.slane %v145_v39, 3  ;;  %v703_v27 = vadd.f32 %v123_v2, %v121_v10 }
  0x4b   :  { %s639_s6 = sld [smem:[#allocation5 + $0x3]]  ;;  %v166_v43 = vmul.f32 %v165_v32, %v589_v0  ;;  %v142_v54 = vadd.f32 %v140_v38, %v135_v37  ;;  %v151_v7 = vstv %s609_s2 }
  0x4c   :  { %s643_s7 = sld [smem:[#allocation2 + $0x5]]  ;;  %v161_v42 = vrot.slane %v159_v28, 1  ;;  %v172_v45 = vstv %s613_s1 }
  0x4d   :  { %v183_v40 = vstv %s620_s27  ;;  %s647_s8 = sld [smem:[#allocation2 + $0x85]]  ;;  %v168_v58 = vrot.slane %v166_v43, 2  ;;  %v173_v59 = vmul.f32 %v172_v45, %v589_v0  ;;  %v149_v11 = vadd.f32 %v147_v55, %v142_v54 }
  0x4e   :  { %v186_v44 = vstv %s625_s28  ;;  %s652_s9 = sld [smem:[#allocation2 + $0x105]]  ;;  %v184_v46 = vmul.f32 %v183_v40, %v589_v0  ;;  %v163_v57 = vadd.f32 %v161_v42, %v156_v41  ;;  %v97_v42 = vmax.f32 %v696_v22, 0.0 }
  0x4f   :  { %v187_v47 = vmul.f32 %v186_v44, %v589_v0  ;;  %v193_v48 = vstv %s630_s29  ;;  %s658_s3 = sld [smem:[#allocation2 + $0x185]]  ;;  %v175_v12 = vrot.slane %v173_v59, 3  ;;  %v710_v31 = vadd.f32 %v151_v7, %v149_v11 }
  0x50   :  { %v194_v51 = vmul.f32 %v193_v48, %v589_v0  ;;  %v200_v52 = vstv %s635_s30  ;;  %s662_s4 = sld [smem:[#allocation5 + $0x4]]  ;;  %v170_v14 = vadd.f32 %v168_v58, %v163_v57 }
  0x51   :  { %v189_v56 = vrot.slane %v187_v47, 1  ;;  %s664_s10 = sld [smem:[#allocation2 + $0x6]]  ;;  %v201_v63 = vmul.f32 %v200_v52, %v589_v0  ;;  %v179_v28 = vstv %s639_s6  ;;  %v153_v50 = vmax.f32 %v710_v31, 0.0 }
  0x52   :  { %v211_v60 = vstv %s643_s7  ;;  %s668_s11 = sld [smem:[#allocation2 + $0x86]]  ;;  %v196_v62 = vrot.slane %v194_v51, 2  ;;  %v177_v26 = vadd.f32 %v175_v12, %v170_v14 }
  0x53   :  { %v191_v61 = vadd.f32 %v189_v56, %v184_v46  ;;  %v214_v1 = vstv %s647_s8  ;;  %s672_s12 = sld [smem:[#allocation2 + $0x106]]  ;;  %v212_v3 = vmul.f32 %v211_v60, %v589_v0  ;;  %v203_v16 = vrot.slane %v201_v63, 3 }
  0x54   :  { %v215_v4 = vmul.f32 %v214_v1, %v589_v0  ;;  %v221_v5 = vstv %s652_s9  ;;  %s678_s14 = sld [smem:[#allocation2 + $0x186]]  ;;  %v125_v46 = vmax.f32 %v703_v27, 0.0  ;;  %v729_v47 = vadd.f32 %v179_v28, %v177_v26 }
  0x55   :  { %v222_v8 = vmul.f32 %v221_v5, %v589_v0  ;;  %v228_v9 = vstv %s658_s3  ;;  %s683_s15 = sld [smem:[#allocation5 + $0x5]]  ;;  %v198_v15 = vadd.f32 %v196_v62, %v191_v61 }
  0x56   :  { %v217_v13 = vrot.slane %v215_v4, 1  ;;  %s685_s16 = sld [smem:[#allocation2 + $0x7]]  ;;  %v229_v20 = vmul.f32 %v228_v9, %v589_v0  ;;  %v207_v32 = vstv %s662_s4  ;;  %v181_v62 = vmax.f32 %v729_v47, 0.0  ;;  %s525_s4 = smov [#allocation10]  }
  0x57   :  { %v239_v17 = vstv %s664_s10  ;;  %s688_s17 = sld [smem:[#allocation2 + $0x87]]  ;;  %v224_v19 = vrot.slane %v222_v8, 2  ;;  %v205_v34 = vadd.f32 %v203_v16, %v198_v15  ;;  %s375_s10 = sshll.u32 %s525_s4, 4  ;;  %s376_s10 = int_to_ptr.vmem [resolvable:$true] %s375_s10 }
  0x58   :  { %v219_v18 = vadd.f32 %v217_v13, %v212_v3  ;;  %v242_v21 = vstv %s668_s11  ;;  %s692_s18 = sld [smem:[#allocation2 + $0x107]]  ;;  %v240_v23 = vmul.f32 %v239_v17, %v589_v0  ;;  %v231_v36 = vrot.slane %v229_v20, 3  ;;  %s493_s11 = scalar_lea.vmem %s376_s10, 32 }
  0x59   :  { %v243_v24 = vmul.f32 %v242_v21, %v589_v0  ;;  %v249_v25 = vstv %s672_s12  ;;  %s701_s19 = sld [smem:[#allocation2 + $0x187]]  ;;  %v736_v51 = vadd.f32 %v207_v32, %v205_v34  ;;  %p494_p6 = scmp.ne.s32.totalorder %s376_s10, %s493_s11 }
  0x5a   :  { %v250_v29 = vmul.f32 %v249_v25, %v589_v0  ;;  %v256_v30 = vstv %s678_s14  ;;  %s708_s20 = sld [smem:[#allocation5 + $0x6]]  ;;  %v226_v35 = vadd.f32 %v224_v19, %v219_v18  ;;  %p498_p7 = scmp.lt.s32.totalorder %s376_s10, %s376_s10 }
  0x5b   :  { %v245_v33 = vrot.slane %v243_v24, 1  ;;  %s713_s13 = sld [smem:[#allocation7]]  ;;  %v257_v40 = vmul.f32 %v256_v30, %v589_v0  ;;  %v235_v63 = vstv %s683_s15  ;;  %p499_p8 = scmp.lt.s32.totalorder %s493_s11, %s493_s11 }
  0x5c   :  { %v267_v37 = vstv %s685_s16  ;;  %s716_s21 = sld [smem:[#allocation7 + $0x80]]  ;;  %v252_v39 = vrot.slane %v250_v29, 2  ;;  %v233_v52 = vadd.f32 %v231_v36, %v226_v35 }
  0x5d   :  { %v247_v38 = vadd.f32 %v245_v33, %v240_v23  ;;  %v270_v41 = vstv %s688_s17  ;;  %s720_s22 = sld [smem:[#allocation7 + $0x100]]  ;;  %v268_v43 = vmul.f32 %v267_v37, %v589_v0  ;;  %v259_v55 = vrot.slane %v257_v40, 3  ;;  %p500_p9 = por %p499_p8, %p498_p7 }
  0x5e   :  { %v271_v44 = vmul.f32 %v270_v41, %v589_v0  ;;  %v277_v45 = vstv %s692_s18  ;;  %s726_s23 = sld [smem:[#allocation7 + $0x180]]  ;;  %v236_v9 = vadd.f32 %v235_v63, %v233_v52 }
  0x5f   :  { %v278_v48 = vmul.f32 %v277_v45, %v589_v0  ;;  %v284_v49 = vstv %s701_s19  ;;  %s733_s24 = sld [smem:[#allocation7 + $0x200]]  ;;  %v254_v54 = vadd.f32 %v252_v39, %v247_v38  ;;  %p501_p10 = pnand %p500_p9, %p494_p6 }
  0x60   :  { %v273_v53 = vrot.slane %v271_v44, 1  ;;  %s738_s25 = sld [smem:[#allocation5 + $0x7]]  ;;  %v285_v56 = vmul.f32 %v284_v49, %v589_v0  ;;  %v209_v0 = vmax.f32 %v736_v51, 0.0  ;;  %v263_v10 = vstv %s708_s20 }
  0x61   :  { %v295_v57 = vstv %s713_s13  ;;  %s742_s26 = sld [smem:[#allocation7 + $0x280]]  ;;  %v280_v59 = vrot.slane %v278_v48, 2  ;;  %v261_v5 = vadd.f32 %v259_v55, %v254_v54  ;;  %v237_v18 = vmax.f32 %v236_v9, 0.0 }
  0x62   :  { %v275_v58 = vadd.f32 %v273_v53, %v268_v43  ;;  %v296_v60 = vmul.f32 %v295_v57, %v97_v42  ;;  %v298_v61 = vstv %s716_s21  ;;  %s745_s0 = sld [smem:[#allocation7 + $0x300]]  ;;  %v287_v12 = vrot.slane %v285_v56, 3 }
  0x63   :  { %v299_v1 = vmul.f32 %v298_v61, %v125_v46  ;;  %v302_v2 = vstv %s720_s22  ;;  %s750_s2 = sld [smem:[#allocation7 + $0x380]]  ;;  %v264_v15 = vadd.f32 %v263_v10, %v261_v5 }
  0x64   :  { %v303_v3 = vmul.f32 %v302_v2, %v153_v50  ;;  %v306_v4 = vstv %s726_s23  ;;  %s431_s1 = sld [smem:[#allocation7 + $0x1]]  ;;  %v282_v11 = vadd.f32 %v280_v59, %v275_v58 }
  0x65   :  { %v300_v6 = vadd.f32 %v299_v1, %v296_v60  ;;  %v307_v7 = vmul.f32 %v306_v4, %v181_v62  ;;  %v310_v8 = vstv %s733_s24  ;;  %s432_s27 = sld [smem:[#allocation7 + $0x81]]  ;;  %v265_v29 = vmax.f32 %v264_v15, 0.0 }
  0x66   :  { %s433_s28 = sld [smem:[#allocation7 + $0x101]]  ;;  %v311_v14 = vmul.f32 %v310_v8, %v209_v0  ;;  %v289_v19 = vadd.f32 %v287_v12, %v282_v11  ;;  %v291_v21 = vstv %s738_s25 }
  0x67   :  { %v304_v13 = vadd.f32 %v303_v3, %v300_v6  ;;  %s434_s29 = sld [smem:[#allocation7 + $0x181]]  ;;  %v314_v17 = vstv %s742_s26 }
  0x68   :  { %s435_s30 = sld [smem:[#allocation7 + $0x201]]  ;;  %v315_v25 = vmul.f32 %v314_v17, %v237_v18  ;;  %v318_v30 = vstv %s745_s0  ;;  %v292_v32 = vadd.f32 %v291_v21, %v289_v19 }
  0x69   :  { %v308_v16 = vadd.f32 %v307_v7, %v304_v13  ;;  %s757_s6 = sld [smem:[#allocation7 + $0x281]]  ;;  %v319_v38 = vmul.f32 %v318_v30, %v265_v29  ;;  %v322_v41 = vstv %s750_s2 }
  0x6a   :  { %v329_v20 = vstv %s431_s1  ;;  %s759_s7 = sld [smem:[#allocation7 + $0x301]]  ;;  %v293_v43 = vmax.f32 %v292_v32, 0.0 }
  0x6b   :  { %v330_v22 = vmul.f32 %v329_v20, %v97_v42  ;;  %v332_v23 = vstv %s432_s27  ;;  %s762_s8 = sld [smem:[#allocation7 + $0x381]]  ;;  %v312_v24 = vadd.f32 %v311_v14, %v308_v16 }
  0x6c   :  { %v333_v27 = vmul.f32 %v332_v23, %v125_v46  ;;  %v336_v28 = vstv %s433_s28  ;;  %s325_s9 = sld [smem:[#allocation8]]  ;;  %v323_v48 = vmul.f32 %v322_v41, %v293_v43 }
  0x6d   :  { %v337_v31 = vmul.f32 %v336_v28, %v153_v50  ;;  %v340_v26 = vstv %s434_s29  ;;  %v316_v37 = vadd.f32 %v315_v25, %v312_v24  ;;  %s439_s3 = sld [smem:[#allocation8 + $0x1]] }
  0x6e   :  { %v334_v33 = vadd.f32 %v333_v27, %v330_v22  ;;  %v341_v34 = vmul.f32 %v340_v26, %v181_v62  ;;  %v344_v35 = vstv %s435_s30 }
  0x6f   :  { %v348_v36 = vstv %s757_s6  ;;  %v345_v40 = vmul.f32 %v344_v35, %v209_v0  ;;  %v320_v47 = vadd.f32 %v319_v38, %v316_v37 }
  0x70   :  { %v338_v39 = vadd.f32 %v337_v31, %v334_v33  ;;  %v352_v42 = vstv %s759_s7  ;;  %v349_v45 = vmul.f32 %v348_v36, %v237_v18 }
  0x71   :  { %v356_v46 = vstv %s762_s8  ;;  %v353_v50 = vmul.f32 %v352_v42, %v265_v29  ;;  %v324_v53 = vadd.f32 %v323_v48, %v320_v47 }
  0x72   :  { %v342_v44 = vadd.f32 %v341_v34, %v338_v39  ;;  %v357_v52 = vmul.f32 %v356_v46, %v293_v43  ;;  %v326_v55 = vstv %s325_s9 }
  0x73   :  { %v360_v56 = vstv %s439_s3  ;;  %v327_v58 = vadd.f32 %v326_v55, %v324_v53 }
  0x74   :  { %v346_v49 = vadd.f32 %v345_v40, %v342_v44 }
  0x76   :  { %v350_v51 = vadd.f32 %v349_v45, %v346_v49 }
  0x78   :  { %v354_v54 = vadd.f32 %v353_v50, %v350_v51 }
  0x7a   :  { %v358_v57 = vadd.f32 %v357_v52, %v354_v54 }
  0x7c   :  { %v361_v59 = vadd.f32 %v360_v56, %v358_v57 }
  0x7e   :  { %v363_v60 = vrot.slane %v361_v59, 7 }
  0x80   :  { %v366_v61 = vsel %vm365_vm0, %v327_v58, %v363_v60 }
  0x81   :  { %368 = vst.msk [vmem:[#allocation10] sm:$0x3] %vm367_vm1, %v366_v61 }
  0x82   :  { %504 = shalt.err (!%p501_p10)
}
  0x83   :  { %378 = dma.vmem_to_hbm [thread:$0]  %s376_s10, 32, %s777_s5, [#allocation3]  }
  0x84   :  { %519 = dma.done.wait [#allocation3], 32  }
  0x85   :  { %520 = vsyncadd [#allocation3], 4294967264 }
  0x86   :  { %382 = vsyncpa [#allocation3], 1 }
  0x87   :  { %383 = vsyncpa [#allocation4], 1 }
  0x88   :  { %384 = vsyncpa [#allocation6], 1 }
  0x89   :  { %385 = vsyncpa [#allocation9], 1 }

</bundles_post_ra>
